<compile_context>
chip_gen: v7x
topology: tpu7x:2x2x1
jax: 0.10.0
libtpu: 0.0.40
codegen_flags: <defaults>
</compile_context>

<pallas_src>
import jax
import jax.numpy as jnp
import numpy as np
from jax.experimental import pallas as pl
from jax.experimental.pallas import tpu as pltpu


def _round_up(x, m):
    return ((x + m - 1) // m) * m


def _tpu_info():
    """Returns (vmem_capacity_bytes, bf16_eup) for the local TPU generation."""
    kind = ""
    try:
        kind = jax.devices()[0].device_kind.lower()
    except Exception:
        pass
    vmem_cap = None
    try:
        vmem_cap = int(pltpu.get_tpu_info().vmem_capacity_bytes)
    except Exception:
        pass
    if vmem_cap is None:
        vmem_cap = (64 if "v7" in kind else 128) * 1024 * 1024
    # v5e and older have no bf16 VPU/EUP path; keep transcendentals in f32 there.
    bf16_eup = not any(t in kind for t in ("v2", "v3", "v4", "v5"))
    return vmem_cap, bf16_eup


def _make_fused_gate_kernel(num_layers, scale, inv_p, bf16_tanh, approx_recip):
    """Fused [Linear -> Tanh]*(L-1) -> Linear -> CustomSigmoid kernel body."""

    def kernel(x_ref, w_ref, b_ref, o_ref):
        # x_ref: (tm, Ep) in the MXU dtype; w_ref: (L, Ep, Ep) transposed weights;
        # b_ref: (L, 1, Ep) f32 biases.
        x = x_ref[...]
        mxu_dtype = x_ref.dtype
        for l in range(num_layers):                       # static unroll, L is small
            y = jnp.dot(x, w_ref[l], preferred_element_type=jnp.float32)
            y = y + b_ref[l]                              # bias add in f32
            if l < num_layers - 1:
                if bf16_tanh and mxu_dtype != jnp.float32:
                    x = jnp.tanh(y.astype(mxu_dtype))     # bf16 EUP path (v6e/v7x)
                else:
                    x = jnp.tanh(y).astype(mxu_dtype)     # f32 tanh (v5e)
            else:
                # CustomSigmoid: scale / (1 + exp(-y / 10**temp)); out[out > 1] = 1.
                gate = scale * pl.reciprocal(1.0 + jnp.exp(-y * inv_p),
                                             approx=approx_recip)
                o_ref[...] = jnp.minimum(gate, 1.0).astype(o_ref.dtype)

    return kernel


def prepare_gate_params(weights, biases, embed_size, mxu_dtype=jnp.bfloat16):
    """Build the transposed / lane-padded parameter stack once; reuse across calls."""
    e_pad = _round_up(embed_size, 128)
    wt = jnp.stack([
        jnp.pad(jnp.asarray(w).T.astype(mxu_dtype),
                ((0, e_pad - embed_size), (0, e_pad - embed_size)))
        for w in weights
    ])                                                    # [L, Ep, Ep]  MXU dtype
    bb = jnp.stack([
        jnp.pad(jnp.asarray(b).astype(jnp.float32),
                (0, e_pad - embed_size)).reshape(1, e_pad)
        for b in biases
    ])                                                    # [L, 1, Ep]   f32 epilogue
    return wt, bb


def gate_layer_forward(embed, weights, biases, temp, *, tm=None,
                       use_bf16_mxu=True, approx_recip=True, prepared=None):
    """Pallas implementation of GateLayer.forward(embed, temp).

    embed:   [B, S, E]
    weights: list of [E, E] (PyTorch convention: [out_features, in_features])
    biases:  list of [E]
    temp:    host-side Python float (as in the PyTorch module)
    """
    b_, s_, e_ = embed.shape
    n = b_ * s_
    num_layers = len(weights)
    out_dtype = embed.dtype

    # Host-side scalar logic, identical to CustomSigmoid.
    scale = float(temp) + 1.0 if temp <= 1 else 2.0
    inv_p = float(10.0 ** (-float(temp)))

    vmem_cap, bf16_eup = _tpu_info()

    # MXU operand dtype: bf16 (f32 accumulation) unless explicitly disabled.
    if use_bf16_mxu and embed.dtype in (jnp.float32, jnp.bfloat16):
        mxu_dtype = jnp.bfloat16
    else:
        mxu_dtype = embed.dtype
    sublane = 16 if mxu_dtype == jnp.bfloat16 else 8

    # Lane-dense padding of the embed dim -> full unmasked vst.
    # NOTE: for tiny E (e.g. the E=32 test shape) padding to 128 lanes means
    # most MXU/EUP work lands on zeros; this kernel is sized for E >= 128.
    e_pad = _round_up(e_, 128)

    # Row tiling: bound per-tile padding to < sublane rows, and use >= 2 grid
    # steps (when n allows) so the "parallel" axis shards across both v7x TCs.
    if tm is None:
        tm = 1024 if vmem_cap >= 96 * 1024 * 1024 else 512
    tm_max = max(sublane, (int(tm) // sublane) * sublane)
    num_tiles = pl.cdiv(n, tm_max)
    if num_tiles == 1 and n >= 2 * sublane:
        num_tiles = 2                                     # let both TCs work (v7x)
    elif num_tiles > 2 and num_tiles % 2 == 1:
        num_tiles += 1                                    # even split across 2 TCs
    tm_eff = _round_up(pl.cdiv(n, num_tiles), sublane)
    num_tiles = pl.cdiv(n, tm_eff)
    n_pad = num_tiles * tm_eff

    # Activations: cast for the MXU; pad only when the shapes require it.
    x = embed.reshape(n, e_)
    if x.dtype != mxu_dtype:
        x = x.astype(mxu_dtype)
    if n_pad != n or e_pad != e_:
        x = jnp.pad(x, ((0, n_pad - n), (0, e_pad - e_)))

    if prepared is None:
        prepared = prepare_gate_params(weights, biases, e_, mxu_dtype)
    wt, bb = prepared

    # VMEM budget: weights single-buffered (Buffered(1)), activation/output
    # tiles double-buffered, f32 intermediates; leave generation-aware headroom.
    itemsize = jnp.dtype(mxu_dtype).itemsize
    out_itemsize = jnp.dtype(out_dtype).itemsize
    vmem_est = (
        num_layers * e_pad * e_pad * itemsize             # resident W^T (1 buffer)
        + num_layers * e_pad * 4                          # biases (f32)
        + 2 * tm_eff * e_pad * itemsize                   # x tiles (double-buffered)
        + 2 * tm_eff * e_pad * out_itemsize               # out tiles (double-buffered)
        + (num_layers + 2) * tm_eff * e_pad * 4           # f32 intermediates
    )
    if vmem_cap <= 64 * 1024 * 1024:                      # v7x: leave ~16 MiB headroom
        limit_cap = vmem_cap - 16 * 1024 * 1024
    else:                                                 # v5e/v6e: allow up to ~100 MiB
        limit_cap = min(vmem_cap - 28 * 1024 * 1024, 100 * 1024 * 1024)
    limit_cap = max(limit_cap, 32 * 1024 * 1024)
    vmem_limit = int(min(limit_cap, max(32 * 1024 * 1024, 2 * vmem_est)))

    kernel = _make_fused_gate_kernel(num_layers, scale, inv_p,
                                     bf16_tanh=bf16_eup,
                                     approx_recip=approx_recip)

    def _run(buffer_params_once):
        pkw = {"pipeline_mode": pl.Buffered(1)} if buffer_params_once else {}
        out = pl.pallas_call(
            kernel,
            out_shape=jax.ShapeDtypeStruct((n_pad, e_pad), out_dtype),
            grid=(num_tiles,),
            in_specs=[
                pl.BlockSpec((tm_eff, e_pad), lambda i: (i, 0)),               # rows
                pl.BlockSpec((num_layers, e_pad, e_pad),
                             lambda i: (0, 0, 0), **pkw),                      # W^T stack
                pl.BlockSpec((num_layers, 1, e_pad),
                             lambda i: (0, 0, 0), **pkw),                      # biases
            ],
            out_specs=pl.BlockSpec((tm_eff, e_pad), lambda i: (i, 0)),
            compiler_params=pltpu.CompilerParams(
                dimension_semantics=("parallel",),   # shards the row grid across TCs
                vmem_limit_bytes=vmem_limit,
            ),
        )(x, wt, bb)
        return jax.block_until_ready(out)

    try:
        out = _run(True)
    except Exception:
        # Fallback if this jax version rejects Buffered(1) on grid-invariant inputs.
        out = _run(False)

    return out[:n, :e_].reshape(b_, s_, e_)


def _reference_forward(embed, weights, biases, temp):
    """Pure-JAX reference for correctness checking."""
    x = embed.astype(jnp.float32)
    n = len(weights)
    for i in range(n):
        x = x @ weights[i].T.astype(jnp.float32) + biases[i].astype(jnp.float32)
        if i < n - 1:
            x = jnp.tanh(x)
    scale = temp + 1.0 if temp <= 1 else 2.0
    out = scale / (1.0 + jnp.exp(-x / (10.0 ** temp)))
    return jnp.minimum(out, 1.0)


if __name__ == "__main__":
    B, S, E = 2, 8, 32          # small shapes consistent with the module
    TEMP = 1.0
    key = jax.random.PRNGKey(0)

    for num_layers in (1, 2):   # 1 = module default; 2 exercises the fused tanh path
        keys = jax.random.split(jax.random.fold_in(key, num_layers), 1 + 2 * num_layers)
        embed = jax.random.normal(keys[0], (B, S, E), dtype=jnp.float32)

        # Deterministic parameter init (PyTorch Linear: weight [E, E], bias [E]).
        bound = 1.0 / np.sqrt(E)
        weights, biases = [], []
        for i in range(num_layers):
            w = jax.random.uniform(keys[1 + 2 * i], (E, E), jnp.float32,
                                   minval=-bound, maxval=bound)
            b = jax.random.uniform(keys[2 + 2 * i], (E,), jnp.float32,
                                   minval=-bound, maxval=bound)
            weights.append(w)
            biases.append(b)

        out = jax.block_until_ready(gate_layer_forward(embed, weights, biases, TEMP))
        ref = _reference_forward(embed, weights, biases, TEMP)
        # Tolerance covers bf16 MXU operands (f32 accumulation) and the EUP
        # approximate reciprocal in the gate epilogue.
        np.testing.assert_allclose(np.asarray(out), np.asarray(ref),
                                   rtol=2e-2, atol=2e-2)

    print("KERNEL_OK")
</pallas_src>

<mosaic_0001>
module attributes {stable_mosaic.version = 11 : i64} {
  func.func @kernel(%arg0: i32, %arg1: memref<16x128xbf16, #tpu.memory_space<vmem>>, %arg2: memref<1x128x128xbf16, #tpu.memory_space<vmem>>, %arg3: memref<1x1x128xf32, #tpu.memory_space<vmem>>, %arg4: memref<16x128xf32, #tpu.memory_space<vmem>>) attributes {dimension_semantics = [#tpu.dimension_semantics<parallel>], iteration_bounds = array<i64: 1>, scalar_prefetch = 0 : i64, scratch_operands = 0 : i64, tpu.core_type = #tpu.core_type<tc>, window_params = [{transform_indices = @transform_0, window_bounds = array<i64: 16, 128>}, {pipeline_mode = #tpu.pipeline_mode<synchronous>, transform_indices = @transform_1, window_bounds = array<i64: 1, 128, 128>}, {pipeline_mode = #tpu.pipeline_mode<synchronous>, transform_indices = @transform_2, window_bounds = array<i64: 1, 1, 128>}, {transform_indices = @transform_3, window_bounds = array<i64: 16, 128>}]} {
    %c0 = arith.constant 0 : index
    %c0_0 = arith.constant 0 : index
    %0 = vector.load %arg1[%c0, %c0_0] : memref<16x128xbf16, #tpu.memory_space<vmem>>, vector<16x128xbf16>
    %c0_1 = arith.constant 0 : index
    %c0_2 = arith.constant 0 : index
    %c0_3 = arith.constant 0 : index
    %1 = vector.load %arg2[%c0_1, %c0_2, %c0_3] : memref<1x128x128xbf16, #tpu.memory_space<vmem>>, vector<1x128x128xbf16>
    %2 = vector.shape_cast %1 : vector<1x128x128xbf16> to vector<128x128xbf16>
    %cst = arith.constant dense<0.000000e+00> : vector<16x128xf32>
    %3 = tpu.matmul %0, %2, %cst {dimension_numbers = #tpu.dot_dimension_numbers<[1], [0], [0], [1], [0, 0, 1, 1], [], []>} : vector<16x128xbf16>, vector<128x128xbf16>, vector<16x128xf32> -> vector<16x128xf32>
    %c0_4 = arith.constant 0 : index
    %c0_5 = arith.constant 0 : index
    %c0_6 = arith.constant 0 : index
    %4 = vector.load %arg3[%c0_4, %c0_5, %c0_6] : memref<1x1x128xf32, #tpu.memory_space<vmem>>, vector<1x1x128xf32>
    %5 = vector.shape_cast %4 : vector<1x1x128xf32> to vector<1x128xf32>
    %6 = vector.broadcast %5 : vector<1x128xf32> to vector<16x128xf32>
    %7 = arith.addf %3, %6 : vector<16x128xf32>
    %cst_7 = arith.constant 0.000000e+00 : f32
    %8 = vector.broadcast %cst_7 : f32 to vector<16x128xf32>
    %9 = arith.subf %8, %7 : vector<16x128xf32>
    %cst_8 = arith.constant 1.000000e-01 : f32
    %10 = vector.broadcast %cst_8 : f32 to vector<16x128xf32>
    %11 = arith.mulf %9, %10 : vector<16x128xf32>
    %12 = math.exp %11 : vector<16x128xf32>
    %cst_9 = arith.constant 1.000000e+00 : f32
    %13 = vector.broadcast %cst_9 : f32 to vector<16x128xf32>
    %14 = arith.addf %13, %12 : vector<16x128xf32>
    %15 = tpu.reciprocal %14 {approx = true} : vector<16x128xf32> -> vector<16x128xf32>
    %cst_10 = arith.constant 2.000000e+00 : f32
    %16 = vector.broadcast %cst_10 : f32 to vector<16x128xf32>
    %17 = arith.mulf %16, %15 : vector<16x128xf32>
    %cst_11 = arith.constant 1.000000e+00 : f32
    %18 = vector.broadcast %cst_11 : f32 to vector<16x128xf32>
    %19 = arith.minimumf %17, %18 : vector<16x128xf32>
    %c0_12 = arith.constant 0 : index
    %c0_13 = arith.constant 0 : index
    %20 = vector.load %arg4[%c0_12, %c0_13] : memref<16x128xf32, #tpu.memory_space<vmem>>, vector<16x128xf32>
    tpu.vector_store %arg4[%c0_12, %c0_13], %19 {strides = array<i32>} : memref<16x128xf32, #tpu.memory_space<vmem>>, vector<16x128xf32>,
    return
  }
  func.func @transform_0(%arg0: i32) -> (i32, i32) {
    %c0_i32 = arith.constant 0 : i32
    %c0_i32_0 = arith.constant 0 : i32
    return %arg0, %c0_i32 : i32, i32
  }
  func.func @transform_1(%arg0: i32) -> (i32, i32, i32) {
    %c0_i32 = arith.constant 0 : i32
    %c0_i32_0 = arith.constant 0 : i32
    %c0_i32_1 = arith.constant 0 : i32
    %c0_i32_2 = arith.constant 0 : i32
    return %c0_i32, %c0_i32_0, %c0_i32_1 : i32, i32, i32
  }
  func.func @transform_2(%arg0: i32) -> (i32, i32, i32) {
    %c0_i32 = arith.constant 0 : i32
    %c0_i32_0 = arith.constant 0 : i32
    %c0_i32_1 = arith.constant 0 : i32
    %c0_i32_2 = arith.constant 0 : i32
    return %c0_i32, %c0_i32_0, %c0_i32_1 : i32, i32, i32
  }
  func.func @transform_3(%arg0: i32) -> (i32, i32) {
    %c0_i32 = arith.constant 0 : i32
    %c0_i32_0 = arith.constant 0 : i32
    return %arg0, %c0_i32 : i32, i32
  }
}

module attributes {stable_mosaic.version = 11 : i64} {
  func.func @kernel(%arg0: i32, %arg1: memref<16x128xbf16, #tpu.memory_space<vmem>>, %arg2: memref<1x128x128xbf16, #tpu.memory_space<vmem>>, %arg3: memref<1x1x128xf32, #tpu.memory_space<vmem>>, %arg4: memref<16x128xf32, #tpu.memory_space<vmem>>) attributes {dimension_semantics = [#tpu.dimension_semantics<parallel>], iteration_bounds = array<i64: 1>, scalar_prefetch = 0 : i64, scratch_operands = 0 : i64, tpu.core_type = #tpu.core_type<tc>, window_params = [{transform_indices = @transform_0, window_bounds = array<i64: 16, 128>}, {pipeline_mode = #tpu.pipeline_mode<synchronous>, transform_indices = @transform_1, window_bounds = array<i64: 1, 128, 128>}, {pipeline_mode = #tpu.pipeline_mode<synchronous>, transform_indices = @transform_2, window_bounds = array<i64: 1, 1, 128>}, {transform_indices = @transform_3, window_bounds = array<i64: 16, 128>}]} {
    %c0 = arith.constant 0 : index
    %c0_0 = arith.constant 0 : index
    %0 = vector.load %arg1[%c0, %c0_0] : memref<16x128xbf16, #tpu.memory_space<vmem>>, vector<16x128xbf16>
    %c0_1 = arith.constant 0 : index
    %c0_2 = arith.constant 0 : index
    %c0_3 = arith.constant 0 : index
    %1 = vector.load %arg2[%c0_1, %c0_2, %c0_3] : memref<1x128x128xbf16, #tpu.memory_space<vmem>>, vector<1x128x128xbf16>
    %2 = vector.shape_cast %1 : vector<1x128x128xbf16> to vector<128x128xbf16>
    %cst = arith.constant dense<0.000000e+00> : vector<16x128xf32>
    %3 = tpu.matmul %0, %2, %cst {dimension_numbers = #tpu.dot_dimension_numbers<[1], [0], [0], [1], [0, 0, 1, 1], [], []>} : vector<16x128xbf16>, vector<128x128xbf16>, vector<16x128xf32> -> vector<16x128xf32>
    %c0_4 = arith.constant 0 : index
    %c0_5 = arith.constant 0 : index
    %c0_6 = arith.constant 0 : index
    %4 = vector.load %arg3[%c0_4, %c0_5, %c0_6] : memref<1x1x128xf32, #tpu.memory_space<vmem>>, vector<1x1x128xf32>
    %5 = vector.shape_cast %4 : vector<1x1x128xf32> to vector<1x128xf32>
    %6 = vector.broadcast %5 : vector<1x128xf32> to vector<16x128xf32>
    %7 = arith.addf %3, %6 : vector<16x128xf32>
    %cst_7 = arith.constant 0.000000e+00 : f32
    %8 = vector.broadcast %cst_7 : f32 to vector<16x128xf32>
    %9 = arith.subf %8, %7 : vector<16x128xf32>
    %cst_8 = arith.constant 1.000000e-01 : f32
    %10 = vector.broadcast %cst_8 : f32 to vector<16x128xf32>
    %11 = arith.mulf %9, %10 : vector<16x128xf32>
    %12 = math.exp %11 : vector<16x128xf32>
    %cst_9 = arith.constant 1.000000e+00 : f32
    %13 = vector.broadcast %cst_9 : f32 to vector<16x128xf32>
    %14 = arith.addf %13, %12 : vector<16x128xf32>
    %15 = tpu.reciprocal %14 {approx = true} : vector<16x128xf32> -> vector<16x128xf32>
    %cst_10 = arith.constant 2.000000e+00 : f32
    %16 = vector.broadcast %cst_10 : f32 to vector<16x128xf32>
    %17 = arith.mulf %16, %15 : vector<16x128xf32>
    %cst_11 = arith.constant 1.000000e+00 : f32
    %18 = vector.broadcast %cst_11 : f32 to vector<16x128xf32>
    %19 = arith.minimumf %17, %18 : vector<16x128xf32>
    %c0_12 = arith.constant 0 : index
    %c0_13 = arith.constant 0 : index
    %20 = vector.load %arg4[%c0_12, %c0_13] : memref<16x128xf32, #tpu.memory_space<vmem>>, vector<16x128xf32>
    tpu.vector_store %arg4[%c0_12, %c0_13], %19 {strides = array<i32>} : memref<16x128xf32, #tpu.memory_space<vmem>>, vector<16x128xf32>,
    return
  }
  func.func @transform_0(%arg0: i32) -> (i32, i32) {
    %c0_i32 = arith.constant 0 : i32
    %c0_i32_0 = arith.constant 0 : i32
    return %arg0, %c0_i32 : i32, i32
  }
  func.func @transform_1(%arg0: i32) -> (i32, i32, i32) {
    %c0_i32 = arith.constant 0 : i32
    %c0_i32_0 = arith.constant 0 : i32
    %c0_i32_1 = arith.constant 0 : i32
    %c0_i32_2 = arith.constant 0 : i32
    return %c0_i32, %c0_i32_0, %c0_i32_1 : i32, i32, i32
  }
  func.func @transform_2(%arg0: i32) -> (i32, i32, i32) {
    %c0_i32 = arith.constant 0 : i32
    %c0_i32_0 = arith.constant 0 : i32
    %c0_i32_1 = arith.constant 0 : i32
    %c0_i32_2 = arith.constant 0 : i32
    return %c0_i32, %c0_i32_0, %c0_i32_1 : i32, i32, i32
  }
  func.func @transform_3(%arg0: i32) -> (i32, i32) {
    %c0_i32 = arith.constant 0 : i32
    %c0_i32_0 = arith.constant 0 : i32
    return %arg0, %c0_i32 : i32, i32
  }
}

</mosaic_0001>

<bundles_post_ra>
// kernel: tpu_custom_call.1
= control target key start
LH: loop header
LB: loop body
LE: loop exit
PB: predicated region body
PF: predicated region fallthrough
CT: control target
= control target key end

     0   :  { %8 = vsyncpa [#allocation3], 0  ;;  %s405_s0 = inlined_call_operand.hbm [shape: bf16[16,128], index: 0, kind: input, shape index: {}]   ;;  %s406_s1 = inlined_call_operand.hbm [shape: bf16[1,128,128], index: 1, kind: input, shape index: {}]   ;;  %s407_s2 = inlined_call_operand.vmem [shape: f32[1,1,128], index: 2, kind: input, shape index: {}]   ;;  %s408_s3 = inlined_call_operand.hbm [shape: f32[16,128], index: 3, kind: output, shape index: {}]  }
   0x1   :  { %9 = vsyncpa [#allocation6], 0 }
   0x2   :  { %10 = vsyncpa [#allocation4], 0  ;;  %s337_s12 = smov [#allocation2]   ;;  %s265_s16 = scalar_lea.hbm %s405_s0, 128 }
   0x3   :  { %s16_s13 = sshll.u32 %s337_s12, 4  ;;  %p266_p0 = scmp.ne.s32.totalorder %s405_s0, %s265_s16  ;;  %s17_s13 = int_to_ptr.vmem [resolvable:$true] %s16_s13 }
   0x4   :  { %p269_p1 = scmp.lt.u32.totalorder %s265_s16, %s405_s0 }
   0x6   :  { %p271_p2 = pnand %p269_p1, %p266_p0 }
   0x8   :  { %274 = shalt.err (!%p271_p2)
}
   0x9   :  { %s275_s21 = scalar_lea.vmem %s17_s13, 128  ;;  %p280_p4 = scmp.lt.s32.totalorder %s17_s13, %s17_s13 }
   0xa   :  { %p276_p3 = scmp.ne.s32.totalorder %s17_s13, %s275_s21  ;;  %p281_p5 = scmp.lt.s32.totalorder %s275_s21, %s275_s21 }
   0xc   :  { %p282_p6 = por %p281_p5, %p280_p4 }
   0xe   :  { %p283_p7 = pnand %p282_p6, %p276_p3 }
  0x10   :  { %286 = shalt.err (!%p283_p7)
}
  0x11   :  { %s338_s22 = smov 64   ;;  %s339_s23 = smov 4  }
  0x12   :  { %22 = dma.hbm_to_vmem [thread:$0]  %s405_s0, 128, %s17_s13, [#allocation3], %s338_s22, %s338_s22, %s339_s23  }
  0x13   :  { %s340_s26 = smov [#allocation5]   ;;  %s287_s30 = scalar_lea.hbm %s406_s1, 1024 }
  0x14   :  { %s28_s27 = sshll.u32 %s340_s26, 4  ;;  %p288_p8 = scmp.ne.s32.totalorder %s406_s1, %s287_s30  ;;  %s29_s27 = int_to_ptr.vmem [resolvable:$true] %s28_s27 }
  0x15   :  { %p291_p9 = scmp.lt.u32.totalorder %s287_s30, %s406_s1 }
  0x17   :  { %p293_p10 = pnand %p291_p9, %p288_p8 }
  0x19   :  { %296 = shalt.err (!%p293_p10)
}
  0x1a   :  { %s297_s8 = scalar_lea.vmem %s29_s27, 1024  ;;  %p302_p12 = scmp.lt.s32.totalorder %s29_s27, %s29_s27 }
  0x1b   :  { %p298_p11 = scmp.ne.s32.totalorder %s29_s27, %s297_s8  ;;  %p303_p13 = scmp.lt.s32.totalorder %s297_s8, %s297_s8 }
  0x1d   :  { %p304_p0 = por %p303_p13, %p302_p12 }
  0x1f   :  { %p305_p1 = pnand %p304_p0, %p298_p11 }
  0x21   :  { %308 = shalt.err (!%p305_p1)
}
  0x22   :  { %34 = dma.hbm_to_vmem [thread:$0]  %s406_s1, 1024, %s29_s27, [#allocation6], %s338_s22, %s338_s22, %s339_s23  }
  0x23   :  { %331 = dma.done.wait [#allocation3], 128  }
  0x24   :  { %332 = vsyncadd [#allocation3], 4294967168 }
  0x25   :  { %333 = dma.done.wait [#allocation6], 1024  }
  0x26   :  { %334 = vsyncadd [#allocation6], 4294966272  ;;  %v341_v0 = vmov 0.0   ;;  %vm342_vm0 = vmmov 0   ;;  %v248_v1 = vld [vmem:[#allocation5] sm:$0xff]   ;;  %v249_v2 = vld [vmem:[#allocation5 + $0x8] sm:$0xff]  }
  0x27   :  { %219 = vmatprep.subr.bf16.mxu0 %v341_v0  ;;  %235 = vmatprep.mubr.msk.bf16.mxu0 %vm342_vm0, %v341_v0  ;;  %v250_v3 = vld [vmem:[#allocation5 + $0x10] sm:$0xff]   ;;  %v251_v4 = vld [vmem:[#allocation5 + $0x18] sm:$0xff]   ;;  %v252_v5 = vld [vmem:[#allocation5 + $0x20] sm:$0xff]  }
  0x28   :  { %220 = vmatpush3.bf16.msra.mxu0 %v248_v1  ;;  %v253_v6 = vld [vmem:[#allocation5 + $0x28] sm:$0xff]   ;;  %v254_v7 = vld [vmem:[#allocation5 + $0x30] sm:$0xff]   ;;  %v255_v8 = vld [vmem:[#allocation5 + $0x38] sm:$0xff]  }
  0x29   :  { %221 = vmatprep.subr.bf16.mxu0 %v341_v0  ;;  %v256_v9 = vld [vmem:[#allocation2] sm:$0xff]  }
  0x2a   :  { %v200_v10 = vld [vmem:[%s407_s2] ss:$0 sm:$0xff]  ;;  %s343_s2 = smov [#allocation7]  }
  0x2b   :  { %s187_s11 = sshll.u32 %s343_s2, 4  ;;  %s188_s11 = int_to_ptr.vmem [resolvable:$true] %s187_s11 }
  0x2c   :  { %222 = vmatpush3.bf16.msra.mxu0 %v249_v2  ;;  %s309_s12 = scalar_lea.vmem %s188_s11, 256  ;;  %p314_p3 = scmp.lt.s32.totalorder %s188_s11, %s188_s11 }
  0x2d   :  { %223 = vmatprep.subr.bf16.mxu0 %v341_v0  ;;  %p310_p2 = scmp.ne.s32.totalorder %s188_s11, %s309_s12  ;;  %p315_p4 = scmp.lt.s32.totalorder %s309_s12, %s309_s12 }
  0x2f   :  { %p316_p5 = por %p315_p4, %p314_p3 }
  0x30   :  { %224 = vmatpush3.bf16.msra.mxu0 %v250_v3 }
  0x31   :  { %225 = vmatprep.subr.bf16.mxu0 %v341_v0  ;;  %p317_p6 = pnand %p316_p5, %p310_p2 }
  0x34   :  { %226 = vmatpush3.bf16.msra.mxu0 %v251_v4 }
  0x35   :  { %227 = vmatprep.subr.bf16.mxu0 %v341_v0 }
  0x38   :  { %228 = vmatpush3.bf16.msra.mxu0 %v252_v5 }
  0x39   :  { %229 = vmatprep.subr.bf16.mxu0 %v341_v0 }
  0x3c   :  { %230 = vmatpush3.bf16.msra.mxu0 %v253_v6 }
  0x3d   :  { %231 = vmatprep.subr.bf16.mxu0 %v341_v0 }
  0x40   :  { %232 = vmatpush3.bf16.msra.mxu0 %v254_v7 }
  0x41   :  { %233 = vmatprep.subr.bf16.mxu0 %v341_v0 }
  0x44   :  { %234 = vmatpush3.bf16.msra.mxu0 %v255_v8 }
  0x47   :  { %236 = vmatmul.mubr.bf16.vlgmr.msra.gmra.mrb[0].mxu0 %v256_v9 }
 0x11a   :  { %v157_v11 = vpop.f32.mrb[0].mxu0 }
 0x11b   :  { %v158_v12 = vadd.f32 %v200_v10, %v157_v11  ;;  %v237_v13 = vpop.f32.mrb[1].mxu0 }
 0x11c   :  { %v160_v14 = vpop.f32.mrb[2].mxu0 }
 0x11d   :  { %v164_v15 = vsub.f32 0.0, %v158_v12  ;;  %v161_v16 = vadd.f32 %v200_v10, %v160_v14  ;;  %v238_v17 = vpop.f32.mrb[3].mxu0 }
 0x11f   :  { %v166_v18 = vmul.f32 0.1, %v164_v15  ;;  %v165_v19 = vsub.f32 0.0, %v161_v16 }
 0x121   :  { %v168_v20 = vmul.f32 1.442695, %v166_v18  ;;  %v167_v21 = vmul.f32 0.1, %v165_v19 }
 0x123   :  { %257 = vpow2.f32 %v168_v20  ;;  %v170_v22 = vmul.f32 1.442695, %v167_v21 }
 0x125   :  { %259 = vpow2.f32 %v170_v22 }
 0x12d   :  { %v258_v23 = vpop.eup %257 }
 0x12e   :  { %v172_v24 = vadd.f32 1.0, %v258_v23 }
 0x12f   :  { %v260_v25 = vpop.eup %259 }
 0x130   :  { %261 = vrcp.f32 %v172_v24  ;;  %v173_v26 = vadd.f32 1.0, %v260_v25 }
 0x132   :  { %263 = vrcp.f32 %v173_v26 }
 0x13a   :  { %v262_v27 = vpop.eup %261 }
 0x13b   :  { %v176_v28 = vmul.f32 2.0, %v262_v27 }
 0x13c   :  { %v264_v29 = vpop.eup %263 }
 0x13d   :  { %v178_v30 = vmin.f32 %v176_v28, 1.0  ;;  %v177_v31 = vmul.f32 2.0, %v264_v29 }
 0x13f   :  { %180 = vst [vmem:[#allocation7] sm:$0xff] %v178_v30  ;;  %v179_v32 = vmin.f32 %v177_v31, 1.0 }
 0x141   :  { %181 = vst [vmem:[#allocation7 + $0x8] sm:$0xff] %v179_v32 }
 0x142   :  { %320 = shalt.err (!%p317_p6)
}
 0x143   :  { %s321_s15 = scalar_lea.hbm %s408_s3, 256 }
 0x144   :  { %p322_p7 = scmp.ne.s32.totalorder %s408_s3, %s321_s15  ;;  %p325_p8 = scmp.lt.u32.totalorder %s321_s15, %s408_s3 }
 0x146   :  { %p327_p9 = pnand %p325_p8, %p322_p7 }
 0x148   :  { %330 = shalt.err (!%p327_p9)
}
 0x149   :  { %s344_s20 = smov 128   ;;  %s345_s21 = smov 8  }
 0x14a   :  { %193 = dma.vmem_to_hbm [thread:$0]  %s188_s11, 256, %s408_s3, [#allocation4], %s344_s20, %s344_s20, %s345_s21  }
 0x14b   :  { %335 = dma.done.wait [#allocation4], 256  }
 0x14c   :  { %336 = vsyncadd [#allocation4], 4294967040 }
 0x14d   :  { %197 = vsyncpa [#allocation3], 1 }
 0x14e   :  { %198 = vsyncpa [#allocation6], 1 }
 0x14f   :  { %199 = vsyncpa [#allocation4], 1 }

// kernel: tpu_custom_call.1
= control target key start
LH: loop header
LB: loop body
LE: loop exit
PB: predicated region body
PF: predicated region fallthrough
CT: control target
= control target key end

     0   :  { %8 = vsyncpa [#allocation3], 0  ;;  %s405_s0 = inlined_call_operand.hbm [shape: bf16[16,128], index: 0, kind: input, shape index: {}]   ;;  %s406_s1 = inlined_call_operand.hbm [shape: bf16[1,128,128], index: 1, kind: input, shape index: {}]   ;;  %s407_s2 = inlined_call_operand.vmem [shape: f32[1,1,128], index: 2, kind: input, shape index: {}]   ;;  %s408_s3 = inlined_call_operand.hbm [shape: f32[16,128], index: 3, kind: output, shape index: {}]  }
   0x1   :  { %9 = vsyncpa [#allocation6], 0 }
   0x2   :  { %10 = vsyncpa [#allocation4], 0  ;;  %s337_s12 = smov [#allocation2]   ;;  %s265_s16 = scalar_lea.hbm %s405_s0, 128 }
   0x3   :  { %s16_s13 = sshll.u32 %s337_s12, 4  ;;  %p266_p0 = scmp.ne.s32.totalorder %s405_s0, %s265_s16  ;;  %s17_s13 = int_to_ptr.vmem [resolvable:$true] %s16_s13 }
   0x4   :  { %p269_p1 = scmp.lt.u32.totalorder %s265_s16, %s405_s0 }
   0x6   :  { %p271_p2 = pnand %p269_p1, %p266_p0 }
   0x8   :  { %274 = shalt.err (!%p271_p2)
}
   0x9   :  { %s275_s21 = scalar_lea.vmem %s17_s13, 128  ;;  %p280_p4 = scmp.lt.s32.totalorder %s17_s13, %s17_s13 }
   0xa   :  { %p276_p3 = scmp.ne.s32.totalorder %s17_s13, %s275_s21  ;;  %p281_p5 = scmp.lt.s32.totalorder %s275_s21, %s275_s21 }
   0xc   :  { %p282_p6 = por %p281_p5, %p280_p4 }
   0xe   :  { %p283_p7 = pnand %p282_p6, %p276_p3 }
  0x10   :  { %286 = shalt.err (!%p283_p7)
}
  0x11   :  { %s338_s22 = smov 64   ;;  %s339_s23 = smov 4  }
  0x12   :  { %22 = dma.hbm_to_vmem [thread:$0]  %s405_s0, 128, %s17_s13, [#allocation3], %s338_s22, %s338_s22, %s339_s23  }
  0x13   :  { %s340_s26 = smov [#allocation5]   ;;  %s287_s30 = scalar_lea.hbm %s406_s1, 1024 }
  0x14   :  { %s28_s27 = sshll.u32 %s340_s26, 4  ;;  %p288_p8 = scmp.ne.s32.totalorder %s406_s1, %s287_s30  ;;  %s29_s27 = int_to_ptr.vmem [resolvable:$true] %s28_s27 }
  0x15   :  { %p291_p9 = scmp.lt.u32.totalorder %s287_s30, %s406_s1 }
  0x17   :  { %p293_p10 = pnand %p291_p9, %p288_p8 }
  0x19   :  { %296 = shalt.err (!%p293_p10)
}
  0x1a   :  { %s297_s8 = scalar_lea.vmem %s29_s27, 1024  ;;  %p302_p12 = scmp.lt.s32.totalorder %s29_s27, %s29_s27 }
  0x1b   :  { %p298_p11 = scmp.ne.s32.totalorder %s29_s27, %s297_s8  ;;  %p303_p13 = scmp.lt.s32.totalorder %s297_s8, %s297_s8 }
  0x1d   :  { %p304_p0 = por %p303_p13, %p302_p12 }
  0x1f   :  { %p305_p1 = pnand %p304_p0, %p298_p11 }
  0x21   :  { %308 = shalt.err (!%p305_p1)
}
  0x22   :  { %34 = dma.hbm_to_vmem [thread:$0]  %s406_s1, 1024, %s29_s27, [#allocation6], %s338_s22, %s338_s22, %s339_s23  }
  0x23   :  { %331 = dma.done.wait [#allocation3], 128  }
  0x24   :  { %332 = vsyncadd [#allocation3], 4294967168 }
  0x25   :  { %333 = dma.done.wait [#allocation6], 1024  }
  0x26   :  { %334 = vsyncadd [#allocation6], 4294966272  ;;  %v341_v0 = vmov 0.0   ;;  %vm342_vm0 = vmmov 0   ;;  %v248_v1 = vld [vmem:[#allocation5] sm:$0xff]   ;;  %v249_v2 = vld [vmem:[#allocation5 + $0x8] sm:$0xff]  }
  0x27   :  { %219 = vmatprep.subr.bf16.mxu0 %v341_v0  ;;  %235 = vmatprep.mubr.msk.bf16.mxu0 %vm342_vm0, %v341_v0  ;;  %v250_v3 = vld [vmem:[#allocation5 + $0x10] sm:$0xff]   ;;  %v251_v4 = vld [vmem:[#allocation5 + $0x18] sm:$0xff]   ;;  %v252_v5 = vld [vmem:[#allocation5 + $0x20] sm:$0xff]  }
  0x28   :  { %220 = vmatpush3.bf16.msra.mxu0 %v248_v1  ;;  %v253_v6 = vld [vmem:[#allocation5 + $0x28] sm:$0xff]   ;;  %v254_v7 = vld [vmem:[#allocation5 + $0x30] sm:$0xff]   ;;  %v255_v8 = vld [vmem:[#allocation5 + $0x38] sm:$0xff]  }
  0x29   :  { %221 = vmatprep.subr.bf16.mxu0 %v341_v0  ;;  %v256_v9 = vld [vmem:[#allocation2] sm:$0xff]  }
  0x2a   :  { %v200_v10 = vld [vmem:[%s407_s2] ss:$0 sm:$0xff]  ;;  %s343_s2 = smov [#allocation7]  }
  0x2b   :  { %s187_s11 = sshll.u32 %s343_s2, 4  ;;  %s188_s11 = int_to_ptr.vmem [resolvable:$true] %s187_s11 }
  0x2c   :  { %222 = vmatpush3.bf16.msra.mxu0 %v249_v2  ;;  %s309_s12 = scalar_lea.vmem %s188_s11, 256  ;;  %p314_p3 = scmp.lt.s32.totalorder %s188_s11, %s188_s11 }
  0x2d   :  { %223 = vmatprep.subr.bf16.mxu0 %v341_v0  ;;  %p310_p2 = scmp.ne.s32.totalorder %s188_s11, %s309_s12  ;;  %p315_p4 = scmp.lt.s32.totalorder %s309_s12, %s309_s12 }
  0x2f   :  { %p316_p5 = por %p315_p4, %p314_p3 }
  0x30   :  { %224 = vmatpush3.bf16.msra.mxu0 %v250_v3 }
  0x31   :  { %225 = vmatprep.subr.bf16.mxu0 %v341_v0  ;;  %p317_p6 = pnand %p316_p5, %p310_p2 }
  0x34   :  { %226 = vmatpush3.bf16.msra.mxu0 %v251_v4 }
  0x35   :  { %227 = vmatprep.subr.bf16.mxu0 %v341_v0 }
  0x38   :  { %228 = vmatpush3.bf16.msra.mxu0 %v252_v5 }
  0x39   :  { %229 = vmatprep.subr.bf16.mxu0 %v341_v0 }
  0x3c   :  { %230 = vmatpush3.bf16.msra.mxu0 %v253_v6 }
  0x3d   :  { %231 = vmatprep.subr.bf16.mxu0 %v341_v0 }
  0x40   :  { %232 = vmatpush3.bf16.msra.mxu0 %v254_v7 }
  0x41   :  { %233 = vmatprep.subr.bf16.mxu0 %v341_v0 }
  0x44   :  { %234 = vmatpush3.bf16.msra.mxu0 %v255_v8 }
  0x47   :  { %236 = vmatmul.mubr.bf16.vlgmr.msra.gmra.mrb[0].mxu0 %v256_v9 }
 0x11a   :  { %v157_v11 = vpop.f32.mrb[0].mxu0 }
 0x11b   :  { %v158_v12 = vadd.f32 %v200_v10, %v157_v11  ;;  %v237_v13 = vpop.f32.mrb[1].mxu0 }
 0x11c   :  { %v160_v14 = vpop.f32.mrb[2].mxu0 }
 0x11d   :  { %v164_v15 = vsub.f32 0.0, %v158_v12  ;;  %v161_v16 = vadd.f32 %v200_v10, %v160_v14  ;;  %v238_v17 = vpop.f32.mrb[3].mxu0 }
 0x11f   :  { %v166_v18 = vmul.f32 0.1, %v164_v15  ;;  %v165_v19 = vsub.f32 0.0, %v161_v16 }
 0x121   :  { %v168_v20 = vmul.f32 1.442695, %v166_v18  ;;  %v167_v21 = vmul.f32 0.1, %v165_v19 }
 0x123   :  { %257 = vpow2.f32 %v168_v20  ;;  %v170_v22 = vmul.f32 1.442695, %v167_v21 }
 0x125   :  { %259 = vpow2.f32 %v170_v22 }
 0x12d   :  { %v258_v23 = vpop.eup %257 }
 0x12e   :  { %v172_v24 = vadd.f32 1.0, %v258_v23 }
 0x12f   :  { %v260_v25 = vpop.eup %259 }
 0x130   :  { %261 = vrcp.f32 %v172_v24  ;;  %v173_v26 = vadd.f32 1.0, %v260_v25 }
 0x132   :  { %263 = vrcp.f32 %v173_v26 }
 0x13a   :  { %v262_v27 = vpop.eup %261 }
 0x13b   :  { %v176_v28 = vmul.f32 2.0, %v262_v27 }
 0x13c   :  { %v264_v29 = vpop.eup %263 }
 0x13d   :  { %v178_v30 = vmin.f32 %v176_v28, 1.0  ;;  %v177_v31 = vmul.f32 2.0, %v264_v29 }
 0x13f   :  { %180 = vst [vmem:[#allocation7] sm:$0xff] %v178_v30  ;;  %v179_v32 = vmin.f32 %v177_v31, 1.0 }
 0x141   :  { %181 = vst [vmem:[#allocation7 + $0x8] sm:$0xff] %v179_v32 }
 0x142   :  { %320 = shalt.err (!%p317_p6)
}
 0x143   :  { %s321_s15 = scalar_lea.hbm %s408_s3, 256 }
 0x144   :  { %p322_p7 = scmp.ne.s32.totalorder %s408_s3, %s321_s15  ;;  %p325_p8 = scmp.lt.u32.totalorder %s321_s15, %s408_s3 }
 0x146   :  { %p327_p9 = pnand %p325_p8, %p322_p7 }
 0x148   :  { %330 = shalt.err (!%p327_p9)
}
 0x149   :  { %s344_s20 = smov 128   ;;  %s345_s21 = smov 8  }
 0x14a   :  { %193 = dma.vmem_to_hbm [thread:$0]  %s188_s11, 256, %s408_s3, [#allocation4], %s344_s20, %s344_s20, %s345_s21  }
 0x14b   :  { %335 = dma.done.wait [#allocation4], 256  }
 0x14c   :  { %336 = vsyncadd [#allocation4], 4294967040 }
 0x14d   :  { %197 = vsyncpa [#allocation3], 1 }
 0x14e   :  { %198 = vsyncpa [#allocation6], 1 }
 0x14f   :  { %199 = vsyncpa [#allocation4], 1 }

</bundles_post_ra>
